<compile_context>
chip_gen: v5e
topology: v5e:2x2
jax: 0.10.0
libtpu: 0.0.40
codegen_flags: <defaults>
</compile_context>

<pallas_src>
import functools

import jax
import jax.numpy as jnp
from jax.experimental import pallas as pl
from jax.experimental.pallas import tpu as pltpu


def _dino_loss_kernel(student_ref, teacher_ref, center_ref,
                      loss_ref, new_center_ref,
                      center_acc_ref,
                      *, student_temp, teacher_temp, center_momentum,
                      inv_loss_norm, inv_center_norm):
    i = pl.program_id(0)

    # ---- init accumulators on the first batch tile ----
    @pl.when(i == 0)
    def _init():
        loss_ref[0, 0] = jnp.float32(0.0)
        center_acc_ref[...] = jnp.zeros_like(center_acc_ref)

    student = student_ref[...].astype(jnp.float32)   # [S, Bt, D]
    teacher = teacher_ref[...].astype(jnp.float32)   # [T, Bt, D]
    center = center_ref[...].astype(jnp.float32)     # [1, D]

    # ---- student log-softmax, summed over views (factorized loss only needs Σ_s log p_s) ----
    s_logits = student * (1.0 / student_temp)
    s_max = jnp.max(s_logits, axis=-1, keepdims=True)                 # lane reduce
    s_shift = s_logits - s_max
    s_lse = jnp.log(jnp.sum(jnp.exp(s_shift), axis=-1, keepdims=True))
    s_logp_sum = jnp.sum(s_shift - s_lse, axis=0)                     # [Bt, D] (VALU adds)

    # ---- teacher softmax of centered / sharpened logits, summed over views ----
    t_logits = (teacher - center[None, :, :]) * (1.0 / teacher_temp)
    t_max = jnp.max(t_logits, axis=-1, keepdims=True)
    t_exp = jnp.exp(t_logits - t_max)
    t_denom = jnp.sum(t_exp, axis=-1, keepdims=True)
    t_probs = t_exp * pl.reciprocal(t_denom, approx=True)             # divide -> EUP vrcp
    t_prob_sum = jnp.sum(t_probs, axis=0)                             # [Bt, D]

    # ---- factorized all-pairs cross-entropy, one fused reduction per tile ----
    tile_loss = jnp.sum(t_prob_sum * (-s_logp_sum))                   # scalar
    loss_ref[0, 0] = loss_ref[0, 0] + tile_loss * inv_loss_norm       # SMEM scalar accum

    # ---- center accumulation: Σ over teacher views and this batch tile ----
    t_row_sum = jnp.sum(teacher, axis=0)                              # [Bt, D] (VALU adds)
    center_acc_ref[...] += jnp.sum(t_row_sum, axis=0, keepdims=True)  # one sublane reduce

    # ---- finalize: EMA center update on the last batch tile ----
    @pl.when(i == pl.num_programs(0) - 1)
    def _finalize():
        batch_center = center_acc_ref[...] * inv_center_norm          # mean over T*B rows
        new_center_ref[...] = (center * center_momentum
                               + batch_center * (1.0 - center_momentum))


def _pick_batch_tile(S, T, B, D, itemsize, budget_bytes=48 * 1024 * 1024):
    """Largest batch tile whose double-buffered inputs + f32 working set fit the
    VMEM budget (48 MiB keeps headroom on v7x's 64 MiB; v5e/v6e have more)."""
    candidates = [bt for bt in (512, 256, 128, 64, 32, 16, 8)
                  if bt <= B and B % bt == 0]
    if not candidates:
        return B                       # tiny / ragged batch: single full-array tile
    for bt in candidates:
        need = (S + T) * bt * D * itemsize * 2      # double-buffered input tiles
        need += 3 * (S + T) * bt * D * 4            # f32 working copies in the body
        if need <= budget_bytes:
            return bt
    return candidates[-1]


def dino_loss(student_views, teacher_views, center,
              student_temp=0.1, teacher_temp=0.04, center_momentum=0.9,
              block_b=None, interpret=False):
    """student_views: [S, B, D]; teacher_views: [T, B, D]; center: [1, D].
    Returns (scalar loss, new_center[1, D]). Inputs may be bf16 or f32."""
    S, B, D = student_views.shape
    T = teacher_views.shape[0]
    assert teacher_views.shape[1:] == (B, D)
    center = center.reshape(1, D)

    if block_b is None:
        block_b = _pick_batch_tile(S, T, B, D, student_views.dtype.itemsize)
    assert B % block_b == 0, (B, block_b)
    num_tiles = B // block_b

    kernel = functools.partial(
        _dino_loss_kernel,
        student_temp=float(student_temp),
        teacher_temp=float(teacher_temp),
        center_momentum=float(center_momentum),
        inv_loss_norm=1.0 / (T * S * B),
        inv_center_norm=1.0 / (T * B),
    )

    bytes_in = ((S + T) * B * D * student_views.dtype.itemsize) + D * 4
    cost = pl.CostEstimate(
        flops=int(10 * (S + T) * B * D),
        transcendentals=int((S + T) * B * D),
        bytes_accessed=int(bytes_in + D * 4 + 4),
    )

    grid_spec = pltpu.PrefetchScalarGridSpec(
        num_scalar_prefetch=0,
        grid=(num_tiles,),
        in_specs=[
            pl.BlockSpec((S, block_b, D), lambda i: (0, i, 0)),   # student batch tile
            pl.BlockSpec((T, block_b, D), lambda i: (0, i, 0)),   # teacher batch tile
            pl.BlockSpec((1, D), lambda i: (0, 0)),               # center (resident)
        ],
        out_specs=[
            # scalar loss accumulator lives in SMEM (no masked 1-lane vst)
            pl.BlockSpec((1, 1), lambda i: (0, 0),
                         memory_space=pltpu.MemorySpace.SMEM),
            pl.BlockSpec((1, D), lambda i: (0, 0)),               # new center
        ],
        scratch_shapes=[pltpu.VMEM((1, D), jnp.float32)],         # center row-sum accum
    )

    loss, new_center = pl.pallas_call(
        kernel,
        out_shape=(
            jax.ShapeDtypeStruct((1, 1), jnp.float32),
            jax.ShapeDtypeStruct((1, D), jnp.float32),
        ),
        grid_spec=grid_spec,
        compiler_params=pltpu.CompilerParams(
            # batch axis carries the loss/center reduction -> serial.
            # TODO(synk): on v7x, emit per-tile partials with a "parallel" axis
            # to shard across both TensorCores and reduce in the wrapper.
            dimension_semantics=("arbitrary",),
            vmem_limit_bytes=48 * 1024 * 1024,
        ),
        cost_estimate=cost,
        interpret=interpret,
    )(student_views, teacher_views, center)
    return loss[0, 0], new_center


def dino_loss_ref(student_views, teacher_views, center,
                  student_temp=0.1, teacher_temp=0.04, center_momentum=0.9):
    """Plain-JAX reference mirroring the PyTorch module (all T*S pairs)."""
    student_views = student_views.astype(jnp.float32)
    teacher_views = teacher_views.astype(jnp.float32)
    center = center.astype(jnp.float32)
    S = student_views.shape[0]
    T = teacher_views.shape[0]
    s_logp = jax.nn.log_softmax(student_views / student_temp, axis=-1)
    t_probs = jax.nn.softmax((teacher_views - center[None]) / teacher_temp, axis=-1)
    total = 0.0
    for ti in range(T):
        for si in range(S):
            total = total + jnp.mean(jnp.sum(-t_probs[ti] * s_logp[si], axis=-1))
    total = total / (T * S)
    batch_center = jnp.mean(teacher_views.reshape(-1, teacher_views.shape[-1]),
                            axis=0, keepdims=True)
    new_center = center * center_momentum + batch_center * (1.0 - center_momentum)
    return total, new_center


if __name__ == "__main__":
    # Small shapes consistent with the module: 3 student views, 2 teacher views,
    # batch=16, out_dim=128; batch tile of 8 exercises the 2-step accumulation.
    S, T, B, D = 3, 2, 16, 128
    key = jax.random.PRNGKey(0)
    k1, k2 = jax.random.split(key)
    student_views = jax.random.normal(k1, (S, B, D), dtype=jnp.float32)
    teacher_views = jax.random.normal(k2, (T, B, D), dtype=jnp.float32)
    center = jnp.zeros((1, D), dtype=jnp.float32)   # deterministic buffer init

    # f32 path
    loss, new_center = dino_loss(student_views, teacher_views, center, block_b=8)
    jax.block_until_ready((loss, new_center))
    loss_ref, center_ref_val = dino_loss_ref(student_views, teacher_views, center)
    assert jnp.allclose(loss, loss_ref, rtol=5e-3, atol=5e-3), (loss, loss_ref)
    assert jnp.allclose(new_center, center_ref_val, rtol=1e-5, atol=1e-6)

    # bf16 feed (HBM-bandwidth path): kernel upcasts to f32 internally.
    s_bf16 = student_views.astype(jnp.bfloat16)
    t_bf16 = teacher_views.astype(jnp.bfloat16)
    loss_bf, center_bf = dino_loss(s_bf16, t_bf16, center, block_b=8)
    jax.block_until_ready((loss_bf, center_bf))
    loss_ref_bf, center_ref_bf = dino_loss_ref(
        s_bf16.astype(jnp.float32), t_bf16.astype(jnp.float32), center)
    assert jnp.allclose(loss_bf, loss_ref_bf, rtol=1e-2, atol=1e-2), (loss_bf, loss_ref_bf)
    assert jnp.allclose(center_bf, center_ref_bf, rtol=1e-3, atol=1e-3)

    print("KERNEL_OK")
</pallas_src>

<mosaic_0001>
module attributes {stable_mosaic.version = 11 : i64} {
  func.func @_dino_loss_kernel(%arg0: i32, %arg1: memref<3x8x128xf32, #tpu.memory_space<vmem>>, %arg2: memref<2x8x128xf32, #tpu.memory_space<vmem>>, %arg3: memref<1x128xf32, #tpu.memory_space<vmem>>, %arg4: memref<1x1xf32, #tpu.memory_space<smem>>, %arg5: memref<1x128xf32, #tpu.memory_space<vmem>>, %arg6: memref<1x128xf32, #tpu.memory_space<vmem>>) attributes {dimension_semantics = [#tpu.dimension_semantics<arbitrary>], iteration_bounds = array<i64: 2>, scalar_prefetch = 0 : i64, scratch_operands = 1 : i64, tpu.core_type = #tpu.core_type<tc>, window_params = [{transform_indices = @transform_0, window_bounds = array<i64: 3, 8, 128>}, {transform_indices = @transform_1, window_bounds = array<i64: 2, 8, 128>}, {pipeline_mode = #tpu.pipeline_mode<synchronous>, transform_indices = @transform_2, window_bounds = array<i64: 1, 128>}, {transform_indices = @transform_3, window_bounds = array<i64: 1, 1>}, {pipeline_mode = #tpu.pipeline_mode<synchronous>, transform_indices = @transform_4, window_bounds = array<i64: 1, 128>}]} {
    %c0_i32 = arith.constant 0 : i32
    %0 = arith.cmpi eq, %arg0, %c0_i32 : i32
    %1 = arith.extui %0 : i1 to i32
    %c0_i32_0 = arith.constant 0 : i32
    %2 = arith.cmpi ne, %1, %c0_i32_0 : i32
    scf.if %2 {
      %cst_29 = arith.constant 0.000000e+00 : f32
      %c0_30 = arith.constant 0 : index
      %c0_31 = arith.constant 0 : index
      %55 = memref.load %arg4[%c0_30, %c0_31] : memref<1x1xf32, #tpu.memory_space<smem>>
      memref.store %cst_29, %arg4[%c0_30, %c0_31] : memref<1x1xf32, #tpu.memory_space<smem>>
      %cst_32 = arith.constant 0.000000e+00 : f32
      %56 = vector.broadcast %cst_32 : f32 to vector<1x128xf32>
      %c0_33 = arith.constant 0 : index
      %c0_34 = arith.constant 0 : index
      %57 = vector.load %arg6[%c0_33, %c0_34] : memref<1x128xf32, #tpu.memory_space<vmem>>, vector<1x128xf32>
      tpu.vector_store %arg6[%c0_33, %c0_34], %56 {strides = array<i32>} : memref<1x128xf32, #tpu.memory_space<vmem>>, vector<1x128xf32>,
    } else {
    }
    %c0 = arith.constant 0 : index
    %c0_1 = arith.constant 0 : index
    %c0_2 = arith.constant 0 : index
    %3 = vector.load %arg1[%c0, %c0_1, %c0_2] : memref<3x8x128xf32, #tpu.memory_space<vmem>>, vector<3x8x128xf32>
    %c0_3 = arith.constant 0 : index
    %c0_4 = arith.constant 0 : index
    %c0_5 = arith.constant 0 : index
    %4 = vector.load %arg2[%c0_3, %c0_4, %c0_5] : memref<2x8x128xf32, #tpu.memory_space<vmem>>, vector<2x8x128xf32>
    %c0_6 = arith.constant 0 : index
    %c0_7 = arith.constant 0 : index
    %5 = vector.load %arg3[%c0_6, %c0_7] : memref<1x128xf32, #tpu.memory_space<vmem>>, vector<1x128xf32>
    %cst = arith.constant 1.000000e+01 : f32
    %6 = vector.broadcast %cst : f32 to vector<3x8x128xf32>
    %7 = arith.mulf %3, %6 : vector<3x8x128xf32>
    %cst_8 = arith.constant dense<0xFF800000> : vector<3x8xf32>
    %8 = vector.multi_reduction <maximumf>, %7, %cst_8 [2] : vector<3x8x128xf32> to vector<3x8xf32>
    %9 = vector.shape_cast %8 : vector<3x8xf32> to vector<3x8x1xf32>
    %10 = vector.broadcast %9 : vector<3x8x1xf32> to vector<3x8x128xf32>
    %11 = arith.subf %7, %10 : vector<3x8x128xf32>
    %12 = math.exp %11 : vector<3x8x128xf32>
    %cst_9 = arith.constant dense<0.000000e+00> : vector<3x8xf32>
    %13 = vector.multi_reduction <add>, %12, %cst_9 [2] : vector<3x8x128xf32> to vector<3x8xf32>
    %14 = vector.shape_cast %13 : vector<3x8xf32> to vector<3x8x1xf32>
    %15 = math.log %14 : vector<3x8x1xf32>
    %16 = vector.broadcast %15 : vector<3x8x1xf32> to vector<3x8x128xf32>
    %17 = arith.subf %11, %16 : vector<3x8x128xf32>
    %cst_10 = arith.constant dense<0.000000e+00> : vector<8x128xf32>
    %18 = vector.multi_reduction <add>, %17, %cst_10 [0] : vector<3x8x128xf32> to vector<8x128xf32>
    %19 = vector.shape_cast %5 : vector<1x128xf32> to vector<1x1x128xf32>
    %20 = vector.broadcast %19 : vector<1x1x128xf32> to vector<2x8x128xf32>
    %21 = arith.subf %4, %20 : vector<2x8x128xf32>
    %cst_11 = arith.constant 2.500000e+01 : f32
    %22 = vector.broadcast %cst_11 : f32 to vector<2x8x128xf32>
    %23 = arith.mulf %21, %22 : vector<2x8x128xf32>
    %cst_12 = arith.constant dense<0xFF800000> : vector<2x8xf32>
    %24 = vector.multi_reduction <maximumf>, %23, %cst_12 [2] : vector<2x8x128xf32> to vector<2x8xf32>
    %25 = vector.shape_cast %24 : vector<2x8xf32> to vector<2x8x1xf32>
    %26 = vector.broadcast %25 : vector<2x8x1xf32> to vector<2x8x128xf32>
    %27 = arith.subf %23, %26 : vector<2x8x128xf32>
    %28 = math.exp %27 : vector<2x8x128xf32>
    %cst_13 = arith.constant dense<0.000000e+00> : vector<2x8xf32>
    %29 = vector.multi_reduction <add>, %28, %cst_13 [2] : vector<2x8x128xf32> to vector<2x8xf32>
    %30 = vector.shape_cast %29 : vector<2x8xf32> to vector<2x8x1xf32>
    %31 = tpu.reciprocal %30 {approx = true} : vector<2x8x1xf32> -> vector<2x8x1xf32>
    %32 = vector.broadcast %31 : vector<2x8x1xf32> to vector<2x8x128xf32>
    %33 = arith.mulf %28, %32 : vector<2x8x128xf32>
    %cst_14 = arith.constant dense<0.000000e+00> : vector<8x128xf32>
    %34 = vector.multi_reduction <add>, %33, %cst_14 [0] : vector<2x8x128xf32> to vector<8x128xf32>
    %cst_15 = arith.constant 0.000000e+00 : f32
    %35 = vector.broadcast %cst_15 : f32 to vector<8x128xf32>
    %36 = arith.subf %35, %18 : vector<8x128xf32>
    %37 = arith.mulf %34, %36 : vector<8x128xf32>
    %38 = vector.shape_cast %37 : vector<8x128xf32> to vector<1x8x128xf32>
    %cst_16 = arith.constant dense<0.000000e+00> : vector<1xf32>
    %39 = vector.multi_reduction <add>, %38, %cst_16 [1, 2] : vector<1x8x128xf32> to vector<1xf32>
    %40 = vector.shape_cast %39 : vector<1xf32> to vector<1x1x1xf32>
    %41 = vector.extract %40[0, 0, 0] : f32 from vector<1x1x1xf32>
    %c0_17 = arith.constant 0 : index
    %c0_18 = arith.constant 0 : index
    %42 = memref.load %arg4[%c0_17, %c0_18] : memref<1x1xf32, #tpu.memory_space<smem>>
    %cst_19 = arith.constant 0.010416667 : f32
    %43 = arith.mulf %41, %cst_19 : f32
    %44 = arith.addf %42, %43 : f32
    %c0_20 = arith.constant 0 : index
    %c0_21 = arith.constant 0 : index
    %45 = memref.load %arg4[%c0_20, %c0_21] : memref<1x1xf32, #tpu.memory_space<smem>>
    memref.store %44, %arg4[%c0_20, %c0_21] : memref<1x1xf32, #tpu.memory_space<smem>>
    %cst_22 = arith.constant dense<0.000000e+00> : vector<8x128xf32>
    %46 = vector.multi_reduction <add>, %4, %cst_22 [0] : vector<2x8x128xf32> to vector<8x128xf32>
    %c0_23 = arith.constant 0 : index
    %c0_24 = arith.constant 0 : index
    %47 = vector.load %arg6[%c0_23, %c0_24] : memref<1x128xf32, #tpu.memory_space<vmem>>, vector<1x128xf32>
    %cst_25 = arith.constant dense<0.000000e+00> : vector<128xf32>
    %48 = vector.multi_reduction <add>, %46, %cst_25 [0] : vector<8x128xf32> to vector<128xf32>
    %49 = vector.shape_cast %48 : vector<128xf32> to vector<1x128xf32>
    %50 = arith.addf %47, %49 : vector<1x128xf32>
    %c0_26 = arith.constant 0 : index
    %c0_27 = arith.constant 0 : index
    %51 = vector.load %arg6[%c0_26, %c0_27] : memref<1x128xf32, #tpu.memory_space<vmem>>, vector<1x128xf32>
    tpu.vector_store %arg6[%c0_26, %c0_27], %50 {strides = array<i32>} : memref<1x128xf32, #tpu.memory_space<vmem>>, vector<1x128xf32>,
    %c1_i32 = arith.constant 1 : i32
    %52 = arith.cmpi eq, %arg0, %c1_i32 : i32
    %53 = arith.extui %52 : i1 to i32
    %c0_i32_28 = arith.constant 0 : i32
    %54 = arith.cmpi ne, %53, %c0_i32_28 : i32
    scf.if %54 {
      %c0_29 = arith.constant 0 : index
      %c0_30 = arith.constant 0 : index
      %55 = vector.load %arg6[%c0_29, %c0_30] : memref<1x128xf32, #tpu.memory_space<vmem>>, vector<1x128xf32>
      %cst_31 = arith.constant 3.125000e-02 : f32
      %56 = vector.broadcast %cst_31 : f32 to vector<1x128xf32>
      %57 = arith.mulf %55, %56 : vector<1x128xf32>
      %cst_32 = arith.constant 0.899999976 : f32
      %58 = vector.broadcast %cst_32 : f32 to vector<1x128xf32>
      %59 = arith.mulf %5, %58 : vector<1x128xf32>
      %cst_33 = arith.constant 1.000000e-01 : f32
      %60 = vector.broadcast %cst_33 : f32 to vector<1x128xf32>
      %61 = arith.mulf %57, %60 : vector<1x128xf32>
      %62 = arith.addf %59, %61 : vector<1x128xf32>
      %c0_34 = arith.constant 0 : index
      %c0_35 = arith.constant 0 : index
      %63 = vector.load %arg5[%c0_34, %c0_35] : memref<1x128xf32, #tpu.memory_space<vmem>>, vector<1x128xf32>
      tpu.vector_store %arg5[%c0_34, %c0_35], %62 {strides = array<i32>} : memref<1x128xf32, #tpu.memory_space<vmem>>, vector<1x128xf32>,
    } else {
    }
    return
  }
  func.func @transform_0(%arg0: i32) -> (i32, i32, i32) {
    %c0_i32 = arith.constant 0 : i32
    %c0_i32_0 = arith.constant 0 : i32
    %c0_i32_1 = arith.constant 0 : i32
    return %c0_i32, %arg0, %c0_i32_0 : i32, i32, i32
  }
  func.func @transform_1(%arg0: i32) -> (i32, i32, i32) {
    %c0_i32 = arith.constant 0 : i32
    %c0_i32_0 = arith.constant 0 : i32
    %c0_i32_1 = arith.constant 0 : i32
    return %c0_i32, %arg0, %c0_i32_0 : i32, i32, i32
  }
  func.func @transform_2(%arg0: i32) -> (i32, i32) {
    %c0_i32 = arith.constant 0 : i32
    %c0_i32_0 = arith.constant 0 : i32
    %c0_i32_1 = arith.constant 0 : i32
    return %c0_i32, %c0_i32_0 : i32, i32
  }
  func.func @transform_3(%arg0: i32) -> (i32, i32) {
    %c0_i32 = arith.constant 0 : i32
    %c0_i32_0 = arith.constant 0 : i32
    %c0_i32_1 = arith.constant 0 : i32
    return %c0_i32, %c0_i32_0 : i32, i32
  }
  func.func @transform_4(%arg0: i32) -> (i32, i32) {
    %c0_i32 = arith.constant 0 : i32
    %c0_i32_0 = arith.constant 0 : i32
    %c0_i32_1 = arith.constant 0 : i32
    return %c0_i32, %c0_i32_0 : i32, i32
  }
}

</mosaic_0001>

<bundles_post_ra>
// kernel: tpu_custom_call.1
= control target key start
LH: loop header
LB: loop body
LE: loop exit
PB: predicated region body
PF: predicated region fallthrough
CT: control target
= control target key end

     0   :  { %10 = vsyncpa [#allocation4], 0  ;;  %s900_s0 = inlined_call_operand.hbm [shape: f32[3,16,128], index: 0, kind: input, shape index: {}]   ;;  %s901_s1 = inlined_call_operand.hbm [shape: f32[2,16,128], index: 1, kind: input, shape index: {}]   ;;  %s902_s2 = inlined_call_operand.vmem [shape: f32[1,128], index: 2, kind: input, shape index: {}]   ;;  %s903_s3 = inlined_call_operand.hbm [shape: f32[1,1], index: 3, kind: output, shape index: {0}]   ;;  %s904_s4 = inlined_call_operand.hbm [shape: f32[1,128], index: 4, kind: output, shape index: {1}]  }
   0x1   :  { %12 = vsyncpa [#allocation4 + $0x1], 0 }
   0x2   :  { %13 = vsyncpa [#allocation8], 0 }
   0x3   :  { %15 = vsyncpa [#allocation8 + $0x1], 0 }
   0x4   :  { %16 = vsyncpa [#allocation6], 0 }
   0x5   :  { %17 = vsyncpa [#allocation5], 0  ;;  %s748_s15 = smov 0   ;;  %s750_s16 = smov 0  }
   0x6   :  { %s752_s17 = smov 0   ;;  %s754_s18 = smov 0  }
   0x7 LB: > { %s767_s19 = sadd.s32 4294967295, %s714_s18   ;;  %s770_s20 = sadd.s32 1, %s714_s18   ;;  %s714_s18 = sphi %s754_s18, %s911_s18   ;;  %s710_s17 = sphi %s752_s17, %s910_s17   ;;  %s706_s16 = sphi %s750_s16, %s909_s16   ;;  %s702_s15 = sphi %s748_s15, %s908_s15  }
   0x8   : > { %s27_s21 = ssub.s32 %s714_s18, %s770_s20  ;;  %s30_s22 = sadd.s32 1, %s710_s17 }
   0x9   : > { %p28_p0 = scmp.eq.s32.totalorder %s27_s21, 0  ;;  %p37_p1 = scmp.ne.s32.totalorder %s710_s17, %s706_s16 }
   0xa   : > { %p38_p2 = scmp.eq.s32.totalorder %s714_s18, 0  ;;  %p43_p3 = scmp.ne.s32.totalorder %s706_s16, %s702_s15 }
   0xb   : > { %s780_s23 = scalar_select %p28_p0, %s710_s17, %s30_s22  }
   0xc   : > { %p39_p4 = por %p38_p2, %p37_p1  ;;  %p44_p5 = scmp.eq.s32.totalorder %s767_s19, 0 }
   0xd   : > { %p501_p6 = scmp.lt.s32.totalorder %s714_s18, 2  ;;  %s789_s25 = sand.u32 1, %s710_s17  }
   0xe   : > { %p784_p7 = por %p44_p5, %p43_p3  ;;  %s478_s26 = smul.u32 24, %s789_s25 }
   0xf   : > { %s465_s27 = sshll.u32 %s714_s18, 3  ;;  %p793_p8 = pnand %p501_p6, %p39_p4 }
  0x10   : > { %s167_s5 = scalar_lea.hbm %s900_s0, %s465_s27  ;;  %s163_s7 = scalar_lea.vmem [#allocation3], %s478_s26 }
  0x11   : > { %s168_s6 = sshll.u32 %s167_s5, 4  ;;  %s170_s8 = sshll.u32 %s163_s7, 4  ;;  %s169_s6 = int_to_ptr.hbm [resolvable:$true] %s168_s6  ;;  %s171_s8 = int_to_ptr.vmem [resolvable:$true] %s170_s8 }
  0x12   : > { %s160_s9 = scalar_lea.sflag [#allocation4], %s789_s25  ;;  %s566_s10 = sshra.s32 %s169_s6, 4  ;;  %s567_s10 = int_to_ptr.hbm [resolvable:$true] %s566_s10 }
  0x13   : > { %s568_s11 = scalar_lea.hbm %s567_s10, 24  ;;  %p570_p10 = pneg %p793_p8 }
  0x14   : > { %p569_p9 = scmp.ne.s32.totalorder %s567_s10, %s568_s11  ;;  %s573_s14 = scalar_lea.hbm %s900_s0, 48 }
  0x15   : > { %p574_p13 = scmp.lt.s32.totalorder %s567_s10, %s900_s0  ;;  %p575_p0 = scmp.lt.s32.totalorder %s573_s14, %s568_s11 }
  0x16   : > { %p571_p11 = pnand %p570_p10, %p569_p9 }
  0x17   : > { %p576_p1 = por %p575_p0, %p574_p13 }
  0x18   : > { %p572_p12 = pneg %p571_p11 }
  0x1a   : > { %p577_p2 = pnand %p576_p1, %p572_p12 }
  0x1c   : > { %580 = shalt.err (!%p577_p2)
}
  0x1d   : > { %s716_s22 = smov 256   ;;  %s717_s26 = smov 128  }
  0x1e   : > { %s718_s29 = smov 8   ;;  %p468_p3 = scmp.ge.s32.totalorder %s714_s18, 1 }
  0x1f   : > { %497 = dma.hbm_to_vmem [thread:$0]  (!%p793_p8), %s169_s6, 384, %s171_s8, %s160_s9, %s716_s22, %s717_s26, %s718_s29  }
  0x20   : > { %p199_p4 = scmp.lt.s32.totalorder %s714_s18, 3  ;;  %s466_s30 = sshll.u32 %s789_s25, 4 }
  0x21   : > { %s188_s11 = scalar_lea.hbm %s901_s1, %s465_s27  ;;  %s184_s12 = scalar_lea.vmem [#allocation7], %s466_s30 }
  0x22   : > { %p822_p5 = pnand %p468_p3, %p199_p4  ;;  %s191_s13 = sshll.u32 %s184_s12, 4  ;;  %s192_s13 = int_to_ptr.vmem [resolvable:$true] %s191_s13 }
  0x23   : > { %s189_s14 = sshll.u32 %s188_s11, 4  ;;  %s181_s15 = scalar_lea.sflag [#allocation8], %s789_s25  ;;  %s190_s14 = int_to_ptr.hbm [resolvable:$true] %s189_s14 }
  0x24   : > { %s596_s6 = sshra.s32 %s190_s14, 4  ;;  %s603_s21 = scalar_lea.hbm %s901_s1, 32  ;;  %s597_s6 = int_to_ptr.hbm [resolvable:$true] %s596_s6 }
  0x25   : > { %s598_s8 = scalar_lea.hbm %s597_s6, 16  ;;  %p604_p12 = scmp.lt.s32.totalorder %s597_s6, %s901_s1 }
  0x26   : > { %p599_p6 = scmp.ne.s32.totalorder %s597_s6, %s598_s8  ;;  %p605_p13 = scmp.lt.s32.totalorder %s603_s21, %s598_s8 }
  0x28   : > { %p601_p9 = pnand %p599_p6, %p570_p10  ;;  %p606_p0 = por %p605_p13, %p604_p12 }
  0x2a   : > { %p602_p11 = pneg %p601_p9 }
  0x2c   : > { %p607_p1 = pnand %p606_p0, %p602_p11 }
  0x2e   : > { %610 = shalt.err (!%p607_p1)
}
  0x2f   : > { %500 = dma.hbm_to_vmem [thread:$0]  (!%p793_p8), %s190_s14, 256, %s192_s13, %s181_s15, %s716_s22, %s717_s26, %s718_s29  }
  0x30   : > { %203 = sbr.rel (%p822_p5) target bundleno = 545 (0x221), region = 32  ;;  %s205_s25 = sand.u32 (!%p822_p5), 1, %s706_s16  }
  0x31   : > { %s479_s30 = smul.u32 (!%p822_p5), 24, %s205_s25  ;;  %s206_s10 = scalar_lea.sflag (!%p822_p5), [#allocation4], %s205_s25 }
  0x33   : > { %s209_s11 = scalar_lea.vmem (!%p822_p5), [#allocation3], %s479_s30 }
  0x35   : > { %685 = dma.done.wait (%p784_p7), %s206_s10, 384  }
  0x36   : > { %687 = vsyncadd (%p784_p7), %s206_s10, 4294966912  ;;  %s469_s28 = sshll.u32 %s205_s25, 4  ;;  %s216_s12 = scalar_lea.sflag [#allocation8], %s205_s25 }
  0x37   : > { %s219_s6 = scalar_lea.vmem [#allocation7], %s469_s28 }
  0x38   : > { %689 = dma.done.wait (%p784_p7), %s216_s12, 256  }
  0x39   : > { %691 = vsyncadd (%p784_p7), %s216_s12, 4294967040  ;;  %p470_p8 = scmp.ne.s32.totalorder %s767_s19, 0 }
  0x3a   : > { %s719_s22 = smov (!%p470_p8), 0.0  }
  0x3b   : > { %248 = sbr.rel (%p470_p8) target bundleno = 66 (0x42), region = 44  ;;  %250 = sst [smem:[#allocation9]] (!%p470_p8), %s719_s22 }
  0x40   : > { %v720_v0 = vmov 0.0  }
  0x41   : > { %251 = vst [vmem:[#allocation2] sm:$0x1] %v720_v0 }
  0x42 PF: > { %v254_v1 = vld [vmem:[%s209_s11 + $0x10] sm:$0xff]  ;;  %v252_v2 = vld [vmem:[%s209_s11] sm:$0xff]  ;;  %v253_v12 = vld [vmem:[%s209_s11 + $0x8] sm:$0xff]  ;;  %s330_s13 = sld [smem:[#allocation9]]  ;;  %p471_p7 = scmp.ne.s32.totalorder %s767_s19, 1 }
  0x43   : > { %v255_v3 = vld [vmem:[%s219_s6] sm:$0xff]  ;;  %v260_v4 = vmul.f32 10.0, %v254_v1  ;;  %v258_v5 = vmul.f32 10.0, %v252_v2  ;;  %v861_v6 = vld [vmem:[%s902_s2] sm:$0x1]  ;;  %v259_v16 = vmul.f32 10.0, %v253_v12 }
  0x44   : > { %v545_v7 = vld [vmem:[%s902_s2] ss:$0 sm:$0xff] }
  0x45   : > { %v256_v8 = vld [vmem:[%s219_s6 + $0x8] sm:$0xff]  ;;  %265 = vmax.xlane.f32.xlu1 %v260_v4  ;;  %261 = vmax.xlane.f32.xlu0 %v258_v5  ;;  %v296_v9 = vsub.f32 %v255_v3, %v545_v7 }
  0x46   : > { %v297_v10 = vsub.f32 %v256_v8, %v545_v7  ;;  %v335_v11 = vadd.f32 %v256_v8, %v255_v3 }
  0x47   : > { %v298_v15 = vmul.f32 25.0, %v296_v9 }
  0x48   : > { %v299_v13 = vmul.f32 25.0, %v297_v10  ;;  %v337_v14 = vrot.slane %v335_v11, 4  ;;  %v336_v21 = vld [vmem:[#allocation2] sm:$0x1] }
  0x4a   : > { %302 = vmax.xlane.f32.xlu2 %v299_v13  ;;  %v338_v17 = vadd.f32 %v337_v14, %v335_v11 }
  0x4c   : > { %v339_v18 = vrot.slane %v338_v17, 2 }
  0x4d   : > { %300 = vmax.xlane.f32.xlu1 %v298_v15  ;;  %263 = vmax.xlane.f32.xlu0 %v259_v16 }
  0x4e   : > { %v340_v19 = vadd.f32 %v339_v18, %v338_v17 }
  0x50   : > { %v341_v20 = vrot.slane %v340_v19, 1 }
  0x52   : > { %v342_v22 = vadd.f32 %v341_v20, %v340_v19 }
  0x54   : > { %v343_v23 = vadd.f32 %v342_v22, %v336_v21 }
  0x56   : > { %344 = vst [vmem:[#allocation2] sm:$0x1] %v343_v23 }
  0xb8   : > { %v266_v24 = vpop.xlane.xlu1 %265  ;;  %v262_v25 = vpop.xlane.xlu0 %261 }
  0xb9   : > { %v269_v26 = vsub.f32 %v260_v4, %v266_v24  ;;  %v267_v27 = vsub.f32 %v258_v5, %v262_v25 }
  0xbb   : > { %v274_v28 = vmul.f32 1.442695, %v269_v26  ;;  %v270_v29 = vmul.f32 1.442695, %v267_v27 }
  0xbd   : > { %546 = vpow2.f32 %v274_v28  ;;  %v303_v34 = vpop.xlane.xlu2 %302 }
  0xbe   : > { %548 = vpow2.f32 %v270_v29  ;;  %v305_v39 = vsub.f32 %v299_v13, %v303_v34 }
  0xc0   : > { %v301_v30 = vpop.xlane.xlu1 %300  ;;  %v264_v31 = vpop.xlane.xlu0 %263  ;;  %v308_v40 = vmul.f32 1.442695, %v305_v39 }
  0xc1   : > { %v304_v32 = vsub.f32 %v298_v15, %v301_v30  ;;  %v268_v33 = vsub.f32 %v259_v16, %v264_v31 }
  0xc3   : > { %v547_v35 = vpop.eup %546  ;;  %v306_v36 = vmul.f32 1.442695, %v304_v32  ;;  %v272_v37 = vmul.f32 1.442695, %v268_v33 }
  0xc4   : > { %v549_v38 = vpop.eup %548  ;;  %280 = vadd.xlane.f32.xlu1 %v547_v35 }
  0xc5   : > { %550 = vpow2.f32 %v306_v36  ;;  %276 = vadd.xlane.f32.xlu2 %v549_v38 }
  0xc6   : > { %552 = vpow2.f32 %v272_v37 }
  0xc7   : > { %554 = vpow2.f32 %v308_v40 }
  0xcb   : > { %v551_v41 = vpop.eup %550 }
  0xcc   : > { %v553_v42 = vpop.eup %552 }
  0xcd   : > { %310 = vadd.xlane.f32.xlu2 %v551_v41  ;;  %278 = vadd.xlane.f32.xlu0 %v553_v42  ;;  %v555_v43 = vpop.eup %554 }
  0xd5   : > { %312 = vadd.xlane.f32.xlu0 %v555_v43 }
 0x137   : > { %v281_v45 = vpop.xlane.xlu1 %280 }
 0x138   : > { %v277_v44 = vpop.xlane.xlu2 %276 }
 0x139   : > { %556 = vlog2.f32 %v277_v44 }
 0x13a   : > { %558 = vlog2.f32 %v281_v45 }
 0x13f   : > { %v557_v47 = vpop.eup %556 }
 0x140   : > { %v279_v46 = vpop.xlane.xlu0 %278  ;;  %v311_v48 = vpop.xlane.xlu2 %310  ;;  %v283_v50 = vmul.f32 0.6931472, %v557_v47 }
 0x141   : > { %560 = vlog2.f32 %v279_v46  ;;  %v559_v49 = vpop.eup %558 }
 0x142   : > { %562 = vrcp.f32 %v311_v48  ;;  %v287_v53 = vmul.f32 0.6931472, %v559_v49  ;;  %v288_v55 = vsub.f32 %v267_v27, %v283_v50 }
 0x144   : > { %v290_v58 = vsub.f32 %v269_v26, %v287_v53 }
 0x147   : > { %v561_v51 = vpop.eup %560 }
 0x148   : > { %v313_v52 = vpop.xlane.xlu0 %312  ;;  %v285_v54 = vmul.f32 0.6931472, %v561_v51  ;;  %v563_v57 = vpop.eup %562 }
 0x149   : > { %564 = vrcp.f32 %v313_v52  ;;  %v316_v62 = vmul.f32 %v563_v57, %v551_v41 }
 0x14a   : > { %v289_v56 = vsub.f32 %v268_v33, %v285_v54 }
 0x14c   : > { %v291_v59 = vadd.f32 %v289_v56, %v288_v55 }
 0x14e   : > { %v292_v61 = vadd.f32 %v291_v59, %v290_v58 }
 0x14f   : > { %v565_v60 = vpop.eup %564 }
 0x150   : > { %v317_v63 = vmul.f32 %v565_v60, %v555_v43  ;;  %v319_v1 = vsub.f32 0.0, %v292_v61 }
 0x152   : > { %v318_v0 = vadd.f32 %v317_v63, %v316_v62 }
 0x154   : > { %v320_v2 = vmul.f32 %v319_v1, %v318_v0 }
 0x156   : > { %321 = vadd.xlane.f32.xlu1 %v320_v2 }
 0x1c9   : > { %v322_v3 = vpop.xlane.xlu1 %321 }
 0x1ca   : > { %v323_v4 = vrot.slane %v322_v3, 4 }
 0x1cc   : > { %v324_v5 = vadd.f32 %v323_v4, %v322_v3 }
 0x1ce   : > { %v325_v7 = vrot.slane %v324_v5, 2 }
 0x1d0   : > { %v326_v8 = vadd.f32 %v325_v7, %v324_v5 }
 0x1d2   : > { %v327_v9 = vrot.slane %v326_v8, 1 }
 0x1d4   : > { %v328_v10 = vadd.f32 %v327_v9, %v326_v8 }
 0x1d6   : > { %480 = vpush %v328_v10 }
 0x207   : > { %s481_s14 = spop %480 }
 0x208   : > { %s331_s15 = smul.f32 0.010416667, %s481_s14 }
 0x209   : > { %348 = sbr.rel (%p471_p7) target bundleno = 534 (0x216), region = 48 }
 0x20a   : > { %s332_s8 = sadd.f32 %s331_s15, %s330_s13 }
 0x20c   : > { %334 = sst [smem:[#allocation9]] %s332_s8 }
 0x20e   : > { %v349_v11 = vld [vmem:[#allocation2] sm:$0x1]  ;;  %v351_v13 = vmul.f32 0.9, %v861_v6 }
 0x20f   : > { %v350_v12 = vmul.f32 0.03125, %v349_v11 }
 0x211   : > { %v352_v14 = vmul.f32 0.1, %v350_v12 }
 0x213   : > { %v353_v15 = vadd.f32 %v352_v14, %v351_v13 }
 0x215   : > { %354 = vst [vmem:[#allocation10] sm:$0x1] %v353_v15 }
 0x216 PF: > { %p502_p10 = scmp.eq.s32.totalorder %s767_s19, 1  ;;  %s361_s21 = sshll.u32 %s903_s3, 4  ;;  %s362_s21 = int_to_ptr.hbm [resolvable:$true] %s361_s21 }
 0x217   : > { %s721_s7 = smov [#allocation9]   ;;  %s373_s30 = sshll.u32 %s904_s4, 4  ;;  %s374_s30 = int_to_ptr.hbm [resolvable:$true] %s373_s30 }
 0x218   : > { %487 = dma.smem_to_hbm (%p502_p10), %s721_s7, 16, %s362_s21, [#allocation6]  }
 0x219   : > { %s722_s10 = smov [#allocation10]  }
 0x21a   : > { %s371_s11 = sshll.u32 %s722_s10, 4  ;;  %s372_s11 = int_to_ptr.vmem [resolvable:$true] %s371_s11 }
 0x21b   : > { %489 = dma.vmem_to_hbm [thread:$0]  (%p502_p10), %s372_s11, 16, %s374_s30, [#allocation5]  }
 0x21c   : > { %693 = dma.done.wait (%p502_p10), [#allocation6], 16  }
 0x21d   : > { %695 = vsyncadd (%p502_p10), [#allocation6], 4294967280 }
 0x21e   : > { %697 = dma.done.wait (%p502_p10), [#allocation5], 16  }
 0x21f   : > { %699 = vsyncadd (%p502_p10), [#allocation5], 4294967280 }
 0x220   : > { %387 = sfence }
 0x221 PF: > { %p20_p2 = scmp.ge.s32.totalorder %s770_s20, 4   ;;  %s908_s15 = smov %s706_s16 }
 0x222   : > { %s909_s16 = smov %s710_s17  ;;  %s910_s17 = smov %s780_s23 }
 0x223   : > { %s911_s18 = smov %s770_s20  ;;  %22 = sbr.rel (!%p20_p2) target bundleno = 7 (0x7), region = 101 }
 0x228   :  { %393 = vsyncpa [#allocation4], 1 }
 0x229   :  { %395 = vsyncpa [#allocation4 + $0x1], 1 }
 0x22a   :  { %396 = vsyncpa [#allocation8], 1 }
 0x22b   :  { %398 = vsyncpa [#allocation8 + $0x1], 1 }
 0x22c   :  { %399 = vsyncpa [#allocation5], 1 }
 0x22d   :  { %401 = vsyncpa [#allocation5 + $0x1], 1 }
 0x22e   :  { %402 = vsyncpa [#allocation6], 1 }
 0x22f   :  { %404 = vsyncpa [#allocation6 + $0x1], 1 }

</bundles_post_ra>
